<compile_context>
chip_gen: v6e
topology: v6e:2x2x1
jax: 0.10.0
libtpu: 0.0.40
codegen_flags: <defaults>
</compile_context>

<pallas_src>
import functools

import jax
import jax.numpy as jnp
from jax.experimental import pallas as pl
from jax.experimental.pallas import tpu as pltpu


def _round_up(x, m):
    return ((x + m - 1) // m) * m


def _vmem_budget_bytes():
    # Generation-aware: ~75% of physical VMEM (v5e/v6e: 128 MiB -> 96 MiB,
    # v7x: 64 MiB -> 48 MiB).  Conservative fallback if the query is unavailable.
    try:
        cap = pltpu.get_tpu_info().vmem_capacity_bytes
        return min(int(cap * 3 // 4), 112 * 1024 * 1024)
    except Exception:
        return 48 * 1024 * 1024


# ----------------------------------------------------------------------------
# Pass 1 (the only Pallas pass): conv-as-matmul, K-tiled accumulation, per-tile
# partial channel stats.  M grid axis is "parallel", K axis is "arbitrary".
# ----------------------------------------------------------------------------
def _conv_stats_kernel(p_ref, w_ref, y_ref, psum_ref, pssq_ref, acc_ref):
    k = pl.program_id(1)

    @pl.when(k == 0)
    def _():
        acc_ref[...] = jnp.zeros_like(acc_ref)

    acc_ref[...] += jnp.dot(p_ref[...], w_ref[...],
                            preferred_element_type=jnp.float32)

    @pl.when(k == pl.num_programs(1) - 1)
    def _():
        acc = acc_ref[...]
        # Per-M-tile partial stats in f32 (reduced across tiles in plain JAX):
        # no cross-tile resident state, so the M axis stays "parallel".
        psum_ref[...] = jnp.sum(acc, axis=0, keepdims=True)[None]
        pssq_ref[...] = jnp.sum(acc * acc, axis=0, keepdims=True)[None]
        # y emitted in compute dtype; only the first y_ref.shape[1] columns
        # (unpadded c_out for small-channel layers) are stored.
        y_ref[...] = acc[:, : y_ref.shape[1]].astype(y_ref.dtype)


# ----------------------------------------------------------------------------
# Wrapper
# ----------------------------------------------------------------------------
def basic_conv2d(x, weight, gamma, beta, *, stride=1, padding=0, dilation=1,
                 eps=1e-5, tm=512, compute_dtype=jnp.bfloat16):
    """x: [N, C_in, H, W]; weight: [C_out, C_in, KH, KW] (no bias)."""
    n, c_in, h, w = x.shape
    c_out, _, kh, kw = weight.shape

    oh = (h + 2 * padding - dilation * (kh - 1) - 1) // stride + 1
    ow = (w + 2 * padding - dilation * (kw - 1) - 1) // stride + 1
    m_true = n * oh * ow
    k_dim = c_in * kh * kw

    # --- im2col, materialized in compute_dtype (bf16 default => half traffic) ---
    # TODO(synk): stream patches straight from a padded NHWC copy of x with a
    # (kh*kw) grid axis and element-offset index_maps instead of materializing
    # the KH*KW-expanded patch matrix in HBM at all.
    x_c = x.astype(compute_dtype)
    x_pad = jnp.pad(x_c, ((0, 0), (0, 0), (padding, padding), (padding, padding)))
    slices = []
    for ikh in range(kh):
        for ikw in range(kw):
            r0 = ikh * dilation
            c0 = ikw * dilation
            sl = x_pad[:, :,
                       r0:r0 + (oh - 1) * stride + 1:stride,
                       c0:c0 + (ow - 1) * stride + 1:stride]      # [N, C_in, OH, OW]
            slices.append(sl)
    patches = jnp.stack(slices, axis=-1)                          # [N, C_in, OH, OW, KH*KW]
    patches = jnp.transpose(patches, (0, 2, 3, 1, 4))             # [N, OH, OW, C_in, KH*KW]
    patches = patches.reshape(m_true, k_dim)

    # --- layout padding / tiling choices ---
    c_out_pad = _round_up(c_out, 128)                             # MXU lane width
    # TODO(synk): for c_out << 128 layers, an operand swap (spatial on lanes)
    # would also recover MXU N-utilization; here we only avoid the HBM waste.
    c_out_y = c_out_pad if c_out >= 128 else _round_up(c_out, 8)  # stored y width

    if k_dim >= 512:
        k_pad = _round_up(k_dim, 128)          # lane-dense patch loads
    else:
        k_pad = _round_up(k_dim, 8)            # tiny k: avoid ~3x patch padding
    if k_pad > 2048:                           # K-tiling for deep layers
        tk = 1024
        k_pad = _round_up(k_pad, tk)
    else:
        tk = k_pad
    grid_k = k_pad // tk

    in_isz = jnp.dtype(compute_dtype).itemsize
    y_isz = jnp.dtype(compute_dtype).itemsize
    budget = _vmem_budget_bytes()

    def _vmem_bytes(t):
        return (2 * t * tk * in_isz              # patch tile (double-buffered)
                + 2 * tk * c_out_pad * in_isz    # weight tile
                + 2 * t * c_out_y * y_isz        # y tile
                + 4 * 2 * c_out_pad * 4          # partial-stat tiles
                + t * c_out_pad * 4)             # f32 accumulator scratch

    m_pad128 = _round_up(m_true, 128)
    tm = max(128, (tm // 128) * 128)
    tm = min(tm, m_pad128)
    while tm > 128 and _vmem_bytes(tm) > budget:
        tm -= 128
    if m_pad128 % tm != 0:
        # Prefer a tile that divides the 128-rounded M unless it costs >2x.
        best = max(d for d in range(128, tm + 1, 128) if m_pad128 % d == 0)
        if 2 * best >= tm:
            tm = best
    m_pad = _round_up(m_pad128, tm)
    grid_m = m_pad // tm

    patches = jnp.pad(patches, ((0, m_pad - m_true), (0, k_pad - k_dim)))
    w_mat = weight.reshape(c_out, k_dim).T.astype(compute_dtype)  # [K, C_out]
    w_mat = jnp.pad(w_mat, ((0, k_pad - k_dim), (0, c_out_pad - c_out)))

    y, psum, pssq = pl.pallas_call(
        _conv_stats_kernel,
        out_shape=(
            jax.ShapeDtypeStruct((m_pad, c_out_y), compute_dtype),
            jax.ShapeDtypeStruct((grid_m, 1, c_out_pad), jnp.float32),
            jax.ShapeDtypeStruct((grid_m, 1, c_out_pad), jnp.float32),
        ),
        grid_spec=pltpu.PrefetchScalarGridSpec(
            num_scalar_prefetch=0,
            grid=(grid_m, grid_k),
            in_specs=[
                pl.BlockSpec((tm, tk), lambda i, k: (i, k)),
                pl.BlockSpec((tk, c_out_pad), lambda i, k: (k, 0)),
            ],
            out_specs=[
                pl.BlockSpec((tm, c_out_y), lambda i, k: (i, 0)),
                pl.BlockSpec((1, 1, c_out_pad), lambda i, k: (i, 0, 0)),
                pl.BlockSpec((1, 1, c_out_pad), lambda i, k: (i, 0, 0)),
            ],
            scratch_shapes=[pltpu.VMEM((tm, c_out_pad), jnp.float32)],
        ),
        compiler_params=pltpu.CompilerParams(
            dimension_semantics=("parallel", "arbitrary"),
            vmem_limit_bytes=budget),
    )(patches, w_mat)

    # --- tiny cross-tile reduction + BN parameters (plain JAX) ---
    m_total = jnp.float32(m_true)
    ch_sum = psum.reshape(grid_m, c_out_pad).sum(axis=0)[:c_out]
    ch_ssq = pssq.reshape(grid_m, c_out_pad).sum(axis=0)[:c_out]
    mean = ch_sum / m_total
    # TODO(synk): E[y^2]-E[y]^2 in f32 can cancel when |mean| >> std at very
    # large M; switch to a shifted/Welford accumulation if that regime matters.
    var = jnp.maximum(ch_ssq / m_total - mean * mean, 0.0)   # biased (training BN)
    inv = jax.lax.rsqrt(var + eps)
    scale = inv * gamma.astype(jnp.float32)                  # (c_out,)
    shift = beta.astype(jnp.float32) - mean * scale          # (c_out,)

    # Fused BN apply in the crop + NHWC->NCHW epilogue (XLA fuses the FMA with
    # the transpose; the old standalone BN pallas_call / y round trip is gone).
    y_f32 = y[:m_true, :c_out].astype(jnp.float32)
    out = y_f32 * scale[None, :] + shift[None, :]
    out = out.reshape(n, oh, ow, c_out)
    # TODO(synk): if the consumer can take NHWC, drop this transpose.
    return jnp.transpose(out, (0, 3, 1, 2))


# ----------------------------------------------------------------------------
# Pure-JAX reference (for correctness check)
# ----------------------------------------------------------------------------
def _reference(x, weight, gamma, beta, *, stride, padding, dilation, eps):
    y = jax.lax.conv_general_dilated(
        x, weight,
        window_strides=(stride, stride),
        padding=[(padding, padding), (padding, padding)],
        rhs_dilation=(dilation, dilation),
        dimension_numbers=("NCHW", "OIHW", "NCHW"))
    mean = y.mean(axis=(0, 2, 3), keepdims=True)
    var = ((y - mean) ** 2).mean(axis=(0, 2, 3), keepdims=True)  # biased
    y_hat = (y - mean) / jnp.sqrt(var + eps)
    return y_hat * gamma.reshape(1, -1, 1, 1) + beta.reshape(1, -1, 1, 1)


if __name__ == "__main__":
    # BasicConv2d(in_planes=4, out_planes=8, kernel_size=3, stride=1, padding=1)
    N, C_IN, H, W = 2, 4, 16, 16
    C_OUT, KH, KW = 8, 3, 3
    STRIDE, PAD, DIL = 1, 1, 1

    key = jax.random.PRNGKey(0)
    kx, kw_ = jax.random.split(key)
    x = jax.random.normal(kx, (N, C_IN, H, W), dtype=jnp.float32)
    weight = jax.random.normal(kw_, (C_OUT, C_IN, KH, KW), dtype=jnp.float32) * 0.1
    gamma = jnp.ones((C_OUT,), dtype=jnp.float32)   # BatchNorm2d default affine init
    beta = jnp.zeros((C_OUT,), dtype=jnp.float32)

    ref = _reference(x, weight, gamma, beta,
                     stride=STRIDE, padding=PAD, dilation=DIL, eps=1e-5)

    # f32-compute path: tight check against the f32 reference.
    fn_f32 = jax.jit(functools.partial(
        basic_conv2d, stride=STRIDE, padding=PAD, dilation=DIL,
        compute_dtype=jnp.float32))
    out_f32 = jax.block_until_ready(fn_f32(x, weight, gamma, beta))
    assert out_f32.shape == ref.shape == (N, C_OUT, H, W)
    assert jnp.allclose(out_f32, ref, atol=1e-4, rtol=1e-4), (
        float(jnp.max(jnp.abs(out_f32 - ref))))

    # Default (bf16 compute + bf16 y) path: looser tolerance = expected
    # mixed-precision drift, not a bug.
    fn_bf16 = jax.jit(functools.partial(
        basic_conv2d, stride=STRIDE, padding=PAD, dilation=DIL))
    out_bf16 = jax.block_until_ready(fn_bf16(x, weight, gamma, beta))
    assert out_bf16.shape == ref.shape
    assert jnp.allclose(out_bf16, ref, atol=1e-1, rtol=1e-1), (
        float(jnp.max(jnp.abs(out_bf16 - ref))))

    print("KERNEL_OK")
</pallas_src>

<mosaic_0001>
module attributes {stable_mosaic.version = 11 : i64} {
  func.func @_conv_stats_kernel(%arg0: i32, %arg1: i32, %arg2: memref<512x40xf32, #tpu.memory_space<vmem>>, %arg3: memref<40x128xf32, #tpu.memory_space<vmem>>, %arg4: memref<512x8xf32, #tpu.memory_space<vmem>>, %arg5: memref<1x1x128xf32, #tpu.memory_space<vmem>>, %arg6: memref<1x1x128xf32, #tpu.memory_space<vmem>>, %arg7: memref<512x128xf32, #tpu.memory_space<vmem>>) attributes {dimension_semantics = [#tpu.dimension_semantics<parallel>, #tpu.dimension_semantics<arbitrary>], iteration_bounds = array<i64: 1, 1>, scalar_prefetch = 0 : i64, scratch_operands = 1 : i64, tpu.core_type = #tpu.core_type<tc>, window_params = [{transform_indices = @transform_0, window_bounds = array<i64: 512, 40>}, {transform_indices = @transform_1, window_bounds = array<i64: 40, 128>}, {transform_indices = @transform_2, window_bounds = array<i64: 512, 8>}, {transform_indices = @transform_3, window_bounds = array<i64: 1, 1, 128>}, {transform_indices = @transform_4, window_bounds = array<i64: 1, 1, 128>}]} {
    %c0_i32 = arith.constant 0 : i32
    %0 = arith.cmpi eq, %arg1, %c0_i32 : i32
    %1 = arith.extui %0 : i1 to i32
    %c0_i32_0 = arith.constant 0 : i32
    %2 = arith.cmpi ne, %1, %c0_i32_0 : i32
    scf.if %2 {
      %cst_10 = arith.constant 0.000000e+00 : f32
      %12 = vector.broadcast %cst_10 : f32 to vector<512x128xf32>
      %c0_11 = arith.constant 0 : index
      %c0_12 = arith.constant 0 : index
      %13 = vector.load %arg7[%c0_11, %c0_12] : memref<512x128xf32, #tpu.memory_space<vmem>>, vector<512x128xf32>
      tpu.vector_store %arg7[%c0_11, %c0_12], %12 {strides = array<i32>} : memref<512x128xf32, #tpu.memory_space<vmem>>, vector<512x128xf32>,
    } else {
    }
    %c0 = arith.constant 0 : index
    %c0_1 = arith.constant 0 : index
    %3 = vector.load %arg7[%c0, %c0_1] : memref<512x128xf32, #tpu.memory_space<vmem>>, vector<512x128xf32>
    %c0_2 = arith.constant 0 : index
    %c0_3 = arith.constant 0 : index
    %4 = vector.load %arg2[%c0_2, %c0_3] : memref<512x40xf32, #tpu.memory_space<vmem>>, vector<512x40xf32>
    %c0_4 = arith.constant 0 : index
    %c0_5 = arith.constant 0 : index
    %5 = vector.load %arg3[%c0_4, %c0_5] : memref<40x128xf32, #tpu.memory_space<vmem>>, vector<40x128xf32>
    %cst = arith.constant dense<0.000000e+00> : vector<512x128xf32>
    %6 = tpu.matmul %4, %5, %cst {dimension_numbers = #tpu.dot_dimension_numbers<[1], [0], [0], [1], [0, 0, 1, 1], [], []>} : vector<512x40xf32>, vector<40x128xf32>, vector<512x128xf32> -> vector<512x128xf32>
    %7 = arith.addf %3, %6 : vector<512x128xf32>
    %c0_6 = arith.constant 0 : index
    %c0_7 = arith.constant 0 : index
    %8 = vector.load %arg7[%c0_6, %c0_7] : memref<512x128xf32, #tpu.memory_space<vmem>>, vector<512x128xf32>
    tpu.vector_store %arg7[%c0_6, %c0_7], %7 {strides = array<i32>} : memref<512x128xf32, #tpu.memory_space<vmem>>, vector<512x128xf32>,
    %c0_i32_8 = arith.constant 0 : i32
    %9 = arith.cmpi eq, %arg1, %c0_i32_8 : i32
    %10 = arith.extui %9 : i1 to i32
    %c0_i32_9 = arith.constant 0 : i32
    %11 = arith.cmpi ne, %10, %c0_i32_9 : i32
    scf.if %11 {
      %c0_10 = arith.constant 0 : index
      %c0_11 = arith.constant 0 : index
      %12 = vector.load %arg7[%c0_10, %c0_11] : memref<512x128xf32, #tpu.memory_space<vmem>>, vector<512x128xf32>
      %cst_12 = arith.constant dense<0.000000e+00> : vector<128xf32>
      %13 = vector.multi_reduction <add>, %12, %cst_12 [0] : vector<512x128xf32> to vector<128xf32>
      %14 = vector.shape_cast %13 : vector<128xf32> to vector<1x128xf32>
      %15 = vector.shape_cast %14 : vector<1x128xf32> to vector<1x1x128xf32>
      %c0_13 = arith.constant 0 : index
      %c0_14 = arith.constant 0 : index
      %c0_15 = arith.constant 0 : index
      %16 = vector.load %arg5[%c0_13, %c0_14, %c0_15] : memref<1x1x128xf32, #tpu.memory_space<vmem>>, vector<1x1x128xf32>
      tpu.vector_store %arg5[%c0_13, %c0_14, %c0_15], %15 {strides = array<i32>} : memref<1x1x128xf32, #tpu.memory_space<vmem>>, vector<1x1x128xf32>,
      %17 = arith.mulf %12, %12 : vector<512x128xf32>
      %cst_16 = arith.constant dense<0.000000e+00> : vector<128xf32>
      %18 = vector.multi_reduction <add>, %17, %cst_16 [0] : vector<512x128xf32> to vector<128xf32>
      %19 = vector.shape_cast %18 : vector<128xf32> to vector<1x128xf32>
      %20 = vector.shape_cast %19 : vector<1x128xf32> to vector<1x1x128xf32>
      %c0_17 = arith.constant 0 : index
      %c0_18 = arith.constant 0 : index
      %c0_19 = arith.constant 0 : index
      %21 = vector.load %arg6[%c0_17, %c0_18, %c0_19] : memref<1x1x128xf32, #tpu.memory_space<vmem>>, vector<1x1x128xf32>
      tpu.vector_store %arg6[%c0_17, %c0_18, %c0_19], %20 {strides = array<i32>} : memref<1x1x128xf32, #tpu.memory_space<vmem>>, vector<1x1x128xf32>,
      %22 = vector.extract_strided_slice %12 {offsets = [0, 0], sizes = [512, 8], strides = [1, 1]} : vector<512x128xf32> to vector<512x8xf32>
      %c0_20 = arith.constant 0 : index
      %c0_21 = arith.constant 0 : index
      %23 = vector.load %arg4[%c0_20, %c0_21] : memref<512x8xf32, #tpu.memory_space<vmem>>, vector<512x8xf32>
      tpu.vector_store %arg4[%c0_20, %c0_21], %22 {strides = array<i32>} : memref<512x8xf32, #tpu.memory_space<vmem>>, vector<512x8xf32>,
    } else {
    }
    return
  }
  func.func @transform_0(%arg0: i32, %arg1: i32) -> (i32, i32) {
    %c0_i32 = arith.constant 0 : i32
    return %arg0, %arg1 : i32, i32
  }
  func.func @transform_1(%arg0: i32, %arg1: i32) -> (i32, i32) {
    %c0_i32 = arith.constant 0 : i32
    %c0_i32_0 = arith.constant 0 : i32
    return %arg1, %c0_i32 : i32, i32
  }
  func.func @transform_2(%arg0: i32, %arg1: i32) -> (i32, i32) {
    %c0_i32 = arith.constant 0 : i32
    %c0_i32_0 = arith.constant 0 : i32
    return %arg0, %c0_i32 : i32, i32
  }
  func.func @transform_3(%arg0: i32, %arg1: i32) -> (i32, i32, i32) {
    %c0_i32 = arith.constant 0 : i32
    %c0_i32_0 = arith.constant 0 : i32
    %c0_i32_1 = arith.constant 0 : i32
    return %arg0, %c0_i32, %c0_i32_0 : i32, i32, i32
  }
  func.func @transform_4(%arg0: i32, %arg1: i32) -> (i32, i32, i32) {
    %c0_i32 = arith.constant 0 : i32
    %c0_i32_0 = arith.constant 0 : i32
    %c0_i32_1 = arith.constant 0 : i32
    return %arg0, %c0_i32, %c0_i32_0 : i32, i32, i32
  }
}

</mosaic_0001>

<bundles_post_ra>
// kernel: basic_conv2d.1
= control target key start
LH: loop header
LB: loop body
LE: loop exit
PB: predicated region body
PF: predicated region fallthrough
CT: control target
= control target key end

     0   :  { %vm215_vm0 = vcmask 326656   ;;  %vm1192_vm1 = vcmask 64512   ;;  %s2268_s1 = inlined_call_operand.vmem [shape: f32[40,128], index: 1, kind: input, shape index: {}]   ;;  %s2269_s0 = inlined_call_operand.vmem [shape: f32[512,40], index: 0, kind: input, shape index: {}]   ;;  %s2270_s2 = inlined_call_operand.vmem [shape: f32[512,8], index: 2, kind: output, shape index: {0}]   ;;  %s2271_s3 = inlined_call_operand.vmem [shape: f32[1,1,128], index: 3, kind: output, shape index: {1}]   ;;  %s2272_s4 = inlined_call_operand.vmem [shape: f32[1,1,128], index: 4, kind: output, shape index: {2}]  }
   0x1   :  { %v214_v0 = vld [vmem:[%s2268_s1 + $0x20] sm:$0xff]  ;;  %v213_v1 = vld [vmem:[%s2268_s1 + $0x18] sm:$0xff]  ;;  %v212_v3 = vld [vmem:[%s2268_s1 + $0x10] sm:$0xff] }
   0x2   :  { %1402 = vmatprep.subr.mxu0 %v214_v0  ;;  %v146_v2 = vld [vmem:[%s2269_s0] sm:$0xff]  ;;  %1508 = vmatprep.subr.mxu1 %v214_v0  ;;  %v211_v4 = vld [vmem:[%s2268_s1 + $0x8] sm:$0xff]  ;;  %v148_v7 = vld [vmem:[%s2269_s0 + $0x10] sm:$0xff] }
   0x3   :  { %1403 = vmatpush3.msra.mxu0 %v214_v0  ;;  %1412 = vmatprep.mubr.msk.f32.mxu0 %vm215_vm0, %v146_v2  ;;  %v210_v5 = vld [vmem:[%s2268_s1] sm:$0xff]  ;;  %v147_v6 = vld [vmem:[%s2269_s0 + $0x8] sm:$0xff]  ;;  %v149_v8 = vld [vmem:[%s2269_s0 + $0x18] sm:$0xff] }
   0x4   :  { %1404 = vmatprep.subr.mxu0 %v213_v1  ;;  %1513 = vmatpush3.msra.mxu1 %v214_v0  ;;  %v178_v9 = vld [vmem:[%s2269_s0 + $0x100] sm:$0xff]  ;;  %v179_v10 = vld [vmem:[%s2269_s0 + $0x108] sm:$0xff]  ;;  %v180_v12 = vld [vmem:[%s2269_s0 + $0x110] sm:$0xff] }
   0x5   :  { %1405 = vmatpush3.msra.mxu0 %v213_v1  ;;  %1509 = vmatprep.subr.mxu1 %v213_v1  ;;  %v150_v11 = vld [vmem:[%s2269_s0 + $0x20] sm:$0xff]  ;;  %v181_v13 = vld [vmem:[%s2269_s0 + $0x118] sm:$0xff]  ;;  %v151_v14 = vld [vmem:[%s2269_s0 + $0x28] sm:$0xff] }
   0x6   :  { %1406 = vmatprep.subr.mxu0 %v212_v3  ;;  %1514 = vmatpush3.msra.mxu1 %v213_v1  ;;  %v182_v15 = vld [vmem:[%s2269_s0 + $0x120] sm:$0xff]  ;;  %v152_v16 = vld [vmem:[%s2269_s0 + $0x30] sm:$0xff]  ;;  %v183_v17 = vld [vmem:[%s2269_s0 + $0x128] sm:$0xff] }
   0x7   :  { %1407 = vmatpush3.msra.mxu0 %v212_v3  ;;  %1510 = vmatprep.subr.mxu1 %v212_v3  ;;  %v153_v18 = vld [vmem:[%s2269_s0 + $0x38] sm:$0xff]  ;;  %v184_v19 = vld [vmem:[%s2269_s0 + $0x130] sm:$0xff]  ;;  %v154_v20 = vld [vmem:[%s2269_s0 + $0x40] sm:$0xff] }
   0x8   :  { %1408 = vmatprep.subr.mxu0 %v211_v4  ;;  %1515 = vmatpush3.msra.mxu1 %v212_v3  ;;  %v185_v21 = vld [vmem:[%s2269_s0 + $0x138] sm:$0xff]  ;;  %v155_v22 = vld [vmem:[%s2269_s0 + $0x48] sm:$0xff]  ;;  %v186_v23 = vld [vmem:[%s2269_s0 + $0x140] sm:$0xff] }
   0x9   :  { %1409 = vmatpush3.msra.mxu0 %v211_v4  ;;  %1511 = vmatprep.subr.mxu1 %v211_v4  ;;  %v156_v24 = vld [vmem:[%s2269_s0 + $0x50] sm:$0xff]  ;;  %v187_v25 = vld [vmem:[%s2269_s0 + $0x148] sm:$0xff]  ;;  %v157_v26 = vld [vmem:[%s2269_s0 + $0x58] sm:$0xff] }
   0xa   :  { %1410 = vmatprep.subr.mxu0 %v210_v5  ;;  %1516 = vmatpush3.msra.mxu1 %v211_v4  ;;  %v188_v27 = vld [vmem:[%s2269_s0 + $0x150] sm:$0xff]  ;;  %v158_v28 = vld [vmem:[%s2269_s0 + $0x60] sm:$0xff]  ;;  %v189_v29 = vld [vmem:[%s2269_s0 + $0x158] sm:$0xff] }
   0xb   :  { %1411 = vmatpush3.msra.mxu0 %v210_v5  ;;  %1512 = vmatprep.subr.mxu1 %v210_v5  ;;  %v159_v30 = vld [vmem:[%s2269_s0 + $0x68] sm:$0xff]  ;;  %v190_v31 = vld [vmem:[%s2269_s0 + $0x160] sm:$0xff]  ;;  %v160_v32 = vld [vmem:[%s2269_s0 + $0x70] sm:$0xff] }
   0xc   :  { %1413 = vmatmul.mubr.msk.f32.vlgmr.msra.gmra.mxu0 %vm215_vm0, %v147_v6  ;;  %1517 = vmatpush3.msra.mxu1 %v210_v5  ;;  %v191_v33 = vld [vmem:[%s2269_s0 + $0x168] sm:$0xff]  ;;  %v161_v34 = vld [vmem:[%s2269_s0 + $0x78] sm:$0xff]  ;;  %v192_v35 = vld [vmem:[%s2269_s0 + $0x170] sm:$0xff] }
   0xd   :  { %1415 = vmatprep.mubr.msk.f32.mxu0 %vm215_vm0, %v148_v7  ;;  %1460 = vmatprep.mubr.msk.f32.mxu1 %vm215_vm0, %v178_v9  ;;  %v162_v36 = vld [vmem:[%s2269_s0 + $0x80] sm:$0xff]  ;;  %v193_v37 = vld [vmem:[%s2269_s0 + $0x178] sm:$0xff]  ;;  %v163_v38 = vld [vmem:[%s2269_s0 + $0x88] sm:$0xff] }
   0xe   :  { %1461 = vmatmul.mubr.msk.f32.vlgmr.msra.gmra.mxu1 %vm215_vm0, %v179_v10  ;;  %v194_v39 = vld [vmem:[%s2269_s0 + $0x180] sm:$0xff]  ;;  %v164_v40 = vld [vmem:[%s2269_s0 + $0x90] sm:$0xff]  ;;  %v195_v41 = vld [vmem:[%s2269_s0 + $0x188] sm:$0xff] }
   0xf   :  { %1463 = vmatprep.mubr.msk.f32.mxu1 %vm215_vm0, %v180_v12  ;;  %v165_v42 = vld [vmem:[%s2269_s0 + $0x98] sm:$0xff]  ;;  %v196_v43 = vld [vmem:[%s2269_s0 + $0x190] sm:$0xff]  ;;  %v166_v44 = vld [vmem:[%s2269_s0 + $0xa0] sm:$0xff] }
  0x10   :  { %1416 = vmatmul.mubr.msk.f32.gmra.mxu0 %vm215_vm0, %v149_v8  ;;  %v197_v45 = vld [vmem:[%s2269_s0 + $0x198] sm:$0xff]  ;;  %v167_v46 = vld [vmem:[%s2269_s0 + $0xa8] sm:$0xff]  ;;  %v198_v47 = vld [vmem:[%s2269_s0 + $0x1a0] sm:$0xff] }
  0x11   :  { %1418 = vmatprep.mubr.msk.f32.mxu0 %vm215_vm0, %v150_v11  ;;  %v168_v48 = vld [vmem:[%s2269_s0 + $0xb0] sm:$0xff]  ;;  %v199_v49 = vld [vmem:[%s2269_s0 + $0x1a8] sm:$0xff]  ;;  %v169_v50 = vld [vmem:[%s2269_s0 + $0xb8] sm:$0xff] }
  0x12   :  { %1464 = vmatmul.mubr.msk.f32.gmra.mxu1 %vm215_vm0, %v181_v13  ;;  %v200_v51 = vld [vmem:[%s2269_s0 + $0x1b0] sm:$0xff]  ;;  %v170_v52 = vld [vmem:[%s2269_s0 + $0xc0] sm:$0xff]  ;;  %v201_v53 = vld [vmem:[%s2269_s0 + $0x1b8] sm:$0xff] }
  0x13   :  { %1466 = vmatprep.mubr.msk.f32.mxu1 %vm215_vm0, %v182_v15  ;;  %v171_v54 = vld [vmem:[%s2269_s0 + $0xc8] sm:$0xff]  ;;  %v202_v55 = vld [vmem:[%s2269_s0 + $0x1c0] sm:$0xff]  ;;  %v172_v56 = vld [vmem:[%s2269_s0 + $0xd0] sm:$0xff] }
  0x14   :  { %1419 = vmatmul.mubr.msk.f32.gmra.mxu0 %vm215_vm0, %v151_v14  ;;  %v203_v57 = vld [vmem:[%s2269_s0 + $0x1c8] sm:$0xff]  ;;  %v173_v58 = vld [vmem:[%s2269_s0 + $0xd8] sm:$0xff]  ;;  %v204_v59 = vld [vmem:[%s2269_s0 + $0x1d0] sm:$0xff] }
  0x15   :  { %1421 = vmatprep.mubr.msk.f32.mxu0 %vm215_vm0, %v152_v16  ;;  %v174_v60 = vld [vmem:[%s2269_s0 + $0xe0] sm:$0xff]  ;;  %v205_v61 = vld [vmem:[%s2269_s0 + $0x1d8] sm:$0xff]  ;;  %v175_v62 = vld [vmem:[%s2269_s0 + $0xe8] sm:$0xff] }
  0x16   :  { %1467 = vmatmul.mubr.msk.f32.gmra.mxu1 %vm215_vm0, %v183_v17  ;;  %v206_v63 = vld [vmem:[%s2269_s0 + $0x1e0] sm:$0xff]  ;;  %v176_v0 = vld [vmem:[%s2269_s0 + $0xf0] sm:$0xff]  ;;  %v207_v1 = vld [vmem:[%s2269_s0 + $0x1e8] sm:$0xff] }
  0x17   :  { %1469 = vmatprep.mubr.msk.f32.mxu1 %vm215_vm0, %v184_v19  ;;  %v177_v2 = vld [vmem:[%s2269_s0 + $0xf8] sm:$0xff]  ;;  %v208_v3 = vld [vmem:[%s2269_s0 + $0x1f0] sm:$0xff] }
  0x18   :  { %1422 = vmatmul.mubr.msk.f32.gmra.mxu0 %vm215_vm0, %v153_v18  ;;  %v209_v4 = vld [vmem:[%s2269_s0 + $0x1f8] sm:$0xff] }
  0x19   :  { %1424 = vmatprep.mubr.msk.f32.mxu0 %vm215_vm0, %v154_v20 }
  0x1a   :  { %1470 = vmatmul.mubr.msk.f32.gmra.mxu1 %vm215_vm0, %v185_v21 }
  0x1b   :  { %1472 = vmatprep.mubr.msk.f32.mxu1 %vm215_vm0, %v186_v23 }
  0x1c   :  { %1425 = vmatmul.mubr.msk.f32.gmra.mxu0 %vm215_vm0, %v155_v22 }
  0x1d   :  { %1427 = vmatprep.mubr.msk.f32.mxu0 %vm215_vm0, %v156_v24 }
  0x1e   :  { %1473 = vmatmul.mubr.msk.f32.gmra.mxu1 %vm215_vm0, %v187_v25 }
  0x1f   :  { %1475 = vmatprep.mubr.msk.f32.mxu1 %vm215_vm0, %v188_v27 }
  0x20   :  { %1428 = vmatmul.mubr.msk.f32.gmra.mxu0 %vm215_vm0, %v157_v26 }
  0x21   :  { %1430 = vmatprep.mubr.msk.f32.mxu0 %vm215_vm0, %v158_v28 }
  0x22   :  { %1476 = vmatmul.mubr.msk.f32.gmra.mxu1 %vm215_vm0, %v189_v29 }
  0x23   :  { %1478 = vmatprep.mubr.msk.f32.mxu1 %vm215_vm0, %v190_v31 }
  0x24   :  { %1431 = vmatmul.mubr.msk.f32.gmra.mxu0 %vm215_vm0, %v159_v30 }
  0x25   :  { %1433 = vmatprep.mubr.msk.f32.mxu0 %vm215_vm0, %v160_v32 }
  0x26   :  { %1479 = vmatmul.mubr.msk.f32.gmra.mxu1 %vm215_vm0, %v191_v33 }
  0x27   :  { %1481 = vmatprep.mubr.msk.f32.mxu1 %vm215_vm0, %v192_v35 }
  0x28   :  { %1434 = vmatmul.mubr.msk.f32.gmra.mxu0 %vm215_vm0, %v161_v34 }
  0x29   :  { %1436 = vmatprep.mubr.msk.f32.mxu0 %vm215_vm0, %v162_v36 }
  0x2a   :  { %1482 = vmatmul.mubr.msk.f32.gmra.mxu1 %vm215_vm0, %v193_v37 }
  0x2b   :  { %1484 = vmatprep.mubr.msk.f32.mxu1 %vm215_vm0, %v194_v39 }
  0x2c   :  { %1437 = vmatmul.mubr.msk.f32.gmra.mxu0 %vm215_vm0, %v163_v38 }
  0x2d   :  { %1439 = vmatprep.mubr.msk.f32.mxu0 %vm215_vm0, %v164_v40 }
  0x2e   :  { %1485 = vmatmul.mubr.msk.f32.gmra.mxu1 %vm215_vm0, %v195_v41 }
  0x2f   :  { %1487 = vmatprep.mubr.msk.f32.mxu1 %vm215_vm0, %v196_v43 }
  0x30   :  { %1440 = vmatmul.mubr.msk.f32.gmra.mxu0 %vm215_vm0, %v165_v42 }
  0x31   :  { %1442 = vmatprep.mubr.msk.f32.mxu0 %vm215_vm0, %v166_v44 }
  0x32   :  { %1488 = vmatmul.mubr.msk.f32.gmra.mxu1 %vm215_vm0, %v197_v45 }
  0x33   :  { %1490 = vmatprep.mubr.msk.f32.mxu1 %vm215_vm0, %v198_v47 }
  0x34   :  { %1443 = vmatmul.mubr.msk.f32.gmra.mxu0 %vm215_vm0, %v167_v46 }
  0x35   :  { %1445 = vmatprep.mubr.msk.f32.mxu0 %vm215_vm0, %v168_v48 }
  0x36   :  { %1491 = vmatmul.mubr.msk.f32.gmra.mxu1 %vm215_vm0, %v199_v49 }
  0x37   :  { %1493 = vmatprep.mubr.msk.f32.mxu1 %vm215_vm0, %v200_v51 }
  0x38   :  { %1446 = vmatmul.mubr.msk.f32.gmra.mxu0 %vm215_vm0, %v169_v50 }
  0x39   :  { %1448 = vmatprep.mubr.msk.f32.mxu0 %vm215_vm0, %v170_v52 }
  0x3a   :  { %1494 = vmatmul.mubr.msk.f32.gmra.mxu1 %vm215_vm0, %v201_v53 }
  0x3b   :  { %1496 = vmatprep.mubr.msk.f32.mxu1 %vm215_vm0, %v202_v55 }
  0x3c   :  { %1449 = vmatmul.mubr.msk.f32.gmra.mxu0 %vm215_vm0, %v171_v54 }
  0x3d   :  { %1451 = vmatprep.mubr.msk.f32.mxu0 %vm215_vm0, %v172_v56 }
  0x3e   :  { %1497 = vmatmul.mubr.msk.f32.gmra.mxu1 %vm215_vm0, %v203_v57 }
  0x3f   :  { %1499 = vmatprep.mubr.msk.f32.mxu1 %vm215_vm0, %v204_v59 }
  0x40   :  { %1452 = vmatmul.mubr.msk.f32.gmra.mxu0 %vm215_vm0, %v173_v58 }
  0x41   :  { %1454 = vmatprep.mubr.msk.f32.mxu0 %vm215_vm0, %v174_v60 }
  0x42   :  { %1500 = vmatmul.mubr.msk.f32.gmra.mxu1 %vm215_vm0, %v205_v61 }
  0x43   :  { %1502 = vmatprep.mubr.msk.f32.mxu1 %vm215_vm0, %v206_v63 }
  0x44   :  { %1455 = vmatmul.mubr.msk.f32.gmra.mxu0 %vm215_vm0, %v175_v62 }
  0x45   :  { %1457 = vmatprep.mubr.msk.f32.mxu0 %vm215_vm0, %v176_v0 }
  0x46   :  { %1503 = vmatmul.mubr.msk.f32.gmra.mxu1 %vm215_vm0, %v207_v1 }
  0x47   :  { %1505 = vmatprep.mubr.msk.f32.mxu1 %vm215_vm0, %v208_v3 }
  0x48   :  { %1458 = vmatmul.mubr.msk.f32.gmra.mxu0 %vm215_vm0, %v177_v2 }
  0x4a   :  { %1506 = vmatmul.mubr.msk.f32.gmra.mxu1 %vm215_vm0, %v209_v4 }
  0xcc   :  { %v1414_v5 = vpop.f32.mrf.mxu0 }
  0xcd   :  { %1194 = vst.msk [vmem:[%s2270_s2 + $0x8] sm:$0xff] %vm1192_vm1, %v1414_v5  ;;  %v1059_v10 = vmul.f32 %v1414_v5, %v1414_v5 }
  0xce   :  { %v474_v6 = vpop.f32.mrf.mxu0  ;;  %v1822_v8 = vpop.f32.mrf.mxu1 }
  0xcf   :  { %v1058_v7 = vmul.f32 %v474_v6, %v474_v6  ;;  %1193 = vst.msk [vmem:[%s2270_s2] sm:$0xff] %vm1192_vm1, %v474_v6  ;;  %1226 = vst.msk [vmem:[%s2270_s2 + $0x108] sm:$0xff] %vm1192_vm1, %v1822_v8  ;;  %v988_v11 = vadd.f32 %v1414_v5, %v474_v6 }
  0xd0   :  { %v1417_v9 = vpop.f32.mrf.mxu0  ;;  %v1833_v12 = vpop.f32.mrf.mxu1 }
  0xd1   :  { %1196 = vst.msk [vmem:[%s2270_s2 + $0x18] sm:$0xff] %vm1192_vm1, %v1417_v9  ;;  %1225 = vst.msk [vmem:[%s2270_s2 + $0x100] sm:$0xff] %vm1192_vm1, %v1833_v12  ;;  %v1122_v14 = vadd.f32 %v1059_v10, %v1058_v7  ;;  %v1061_v19 = vmul.f32 %v1417_v9, %v1417_v9 }
  0xd2   :  { %v484_v13 = vpop.f32.mrf.mxu0  ;;  %v1844_v17 = vpop.f32.mrf.mxu1 }
  0xd3   :  { %v989_v15 = vadd.f32 %v988_v11, %v484_v13  ;;  %v1060_v16 = vmul.f32 %v484_v13, %v484_v13  ;;  %1195 = vst.msk [vmem:[%s2270_s2 + $0x10] sm:$0xff] %vm1192_vm1, %v484_v13  ;;  %1228 = vst.msk [vmem:[%s2270_s2 + $0x118] sm:$0xff] %vm1192_vm1, %v1844_v17 }
  0xd4   :  { %v1420_v18 = vpop.f32.mrf.mxu0  ;;  %v1855_v22 = vpop.f32.mrf.mxu1 }
  0xd5   :  { %v1123_v20 = vadd.f32 %v1122_v14, %v1060_v16  ;;  %1198 = vst.msk [vmem:[%s2270_s2 + $0x28] sm:$0xff] %vm1192_vm1, %v1420_v18  ;;  %v990_v21 = vadd.f32 %v1417_v9, %v989_v15  ;;  %1227 = vst.msk [vmem:[%s2270_s2 + $0x110] sm:$0xff] %vm1192_vm1, %v1855_v22  ;;  %v1063_v29 = vmul.f32 %v1420_v18, %v1420_v18 }
  0xd6   :  { %v494_v23 = vpop.f32.mrf.mxu0  ;;  %v1866_v27 = vpop.f32.mrf.mxu1 }
  0xd7   :  { %v991_v24 = vadd.f32 %v990_v21, %v494_v23  ;;  %v1062_v25 = vmul.f32 %v494_v23, %v494_v23  ;;  %v1124_v26 = vadd.f32 %v1123_v20, %v1061_v19  ;;  %1197 = vst.msk [vmem:[%s2270_s2 + $0x20] sm:$0xff] %vm1192_vm1, %v494_v23  ;;  %1230 = vst.msk [vmem:[%s2270_s2 + $0x128] sm:$0xff] %vm1192_vm1, %v1866_v27 }
  0xd8   :  { %v1423_v28 = vpop.f32.mrf.mxu0  ;;  %v1877_v32 = vpop.f32.mrf.mxu1 }
  0xd9   :  { %v1125_v30 = vadd.f32 %v1124_v26, %v1062_v25  ;;  %1200 = vst.msk [vmem:[%s2270_s2 + $0x38] sm:$0xff] %vm1192_vm1, %v1423_v28  ;;  %v992_v31 = vadd.f32 %v1420_v18, %v991_v24  ;;  %1229 = vst.msk [vmem:[%s2270_s2 + $0x120] sm:$0xff] %vm1192_vm1, %v1877_v32  ;;  %v1065_v39 = vmul.f32 %v1423_v28, %v1423_v28 }
  0xda   :  { %v504_v33 = vpop.f32.mrf.mxu0  ;;  %v1888_v37 = vpop.f32.mrf.mxu1 }
  0xdb   :  { %v993_v34 = vadd.f32 %v992_v31, %v504_v33  ;;  %v1064_v35 = vmul.f32 %v504_v33, %v504_v33  ;;  %v1126_v36 = vadd.f32 %v1125_v30, %v1063_v29  ;;  %1199 = vst.msk [vmem:[%s2270_s2 + $0x30] sm:$0xff] %vm1192_vm1, %v504_v33  ;;  %1232 = vst.msk [vmem:[%s2270_s2 + $0x138] sm:$0xff] %vm1192_vm1, %v1888_v37 }
  0xdc   :  { %v1426_v38 = vpop.f32.mrf.mxu0  ;;  %v1899_v42 = vpop.f32.mrf.mxu1 }
  0xdd   :  { %v1127_v40 = vadd.f32 %v1126_v36, %v1064_v35  ;;  %1202 = vst.msk [vmem:[%s2270_s2 + $0x48] sm:$0xff] %vm1192_vm1, %v1426_v38  ;;  %v994_v41 = vadd.f32 %v1423_v28, %v993_v34  ;;  %1231 = vst.msk [vmem:[%s2270_s2 + $0x130] sm:$0xff] %vm1192_vm1, %v1899_v42  ;;  %v1067_v49 = vmul.f32 %v1426_v38, %v1426_v38 }
  0xde   :  { %v514_v43 = vpop.f32.mrf.mxu0  ;;  %v1910_v47 = vpop.f32.mrf.mxu1 }
  0xdf   :  { %v995_v44 = vadd.f32 %v994_v41, %v514_v43  ;;  %v1066_v45 = vmul.f32 %v514_v43, %v514_v43  ;;  %v1128_v46 = vadd.f32 %v1127_v40, %v1065_v39  ;;  %1201 = vst.msk [vmem:[%s2270_s2 + $0x40] sm:$0xff] %vm1192_vm1, %v514_v43  ;;  %1234 = vst.msk [vmem:[%s2270_s2 + $0x148] sm:$0xff] %vm1192_vm1, %v1910_v47 }
  0xe0   :  { %v1429_v48 = vpop.f32.mrf.mxu0  ;;  %v1921_v52 = vpop.f32.mrf.mxu1 }
  0xe1   :  { %v1129_v50 = vadd.f32 %v1128_v46, %v1066_v45  ;;  %1204 = vst.msk [vmem:[%s2270_s2 + $0x58] sm:$0xff] %vm1192_vm1, %v1429_v48  ;;  %v996_v51 = vadd.f32 %v1426_v38, %v995_v44  ;;  %1233 = vst.msk [vmem:[%s2270_s2 + $0x140] sm:$0xff] %vm1192_vm1, %v1921_v52  ;;  %v1069_v59 = vmul.f32 %v1429_v48, %v1429_v48 }
  0xe2   :  { %v524_v53 = vpop.f32.mrf.mxu0  ;;  %v1932_v57 = vpop.f32.mrf.mxu1 }
  0xe3   :  { %v997_v54 = vadd.f32 %v996_v51, %v524_v53  ;;  %v1068_v55 = vmul.f32 %v524_v53, %v524_v53  ;;  %v1130_v56 = vadd.f32 %v1129_v50, %v1067_v49  ;;  %1203 = vst.msk [vmem:[%s2270_s2 + $0x50] sm:$0xff] %vm1192_vm1, %v524_v53  ;;  %1236 = vst.msk [vmem:[%s2270_s2 + $0x158] sm:$0xff] %vm1192_vm1, %v1932_v57 }
  0xe4   :  { %v1432_v58 = vpop.f32.mrf.mxu0  ;;  %v1943_v62 = vpop.f32.mrf.mxu1 }
  0xe5   :  { %v1131_v60 = vadd.f32 %v1130_v56, %v1068_v55  ;;  %1206 = vst.msk [vmem:[%s2270_s2 + $0x68] sm:$0xff] %vm1192_vm1, %v1432_v58  ;;  %v998_v61 = vadd.f32 %v1429_v48, %v997_v54  ;;  %1235 = vst.msk [vmem:[%s2270_s2 + $0x150] sm:$0xff] %vm1192_vm1, %v1943_v62  ;;  %v1071_v5 = vmul.f32 %v1432_v58, %v1432_v58 }
  0xe6   :  { %v534_v63 = vpop.f32.mrf.mxu0  ;;  %v1954_v3 = vpop.f32.mrf.mxu1 }
  0xe7   :  { %v999_v0 = vadd.f32 %v998_v61, %v534_v63  ;;  %v1070_v1 = vmul.f32 %v534_v63, %v534_v63  ;;  %v1132_v2 = vadd.f32 %v1131_v60, %v1069_v59  ;;  %1205 = vst.msk [vmem:[%s2270_s2 + $0x60] sm:$0xff] %vm1192_vm1, %v534_v63  ;;  %1238 = vst.msk [vmem:[%s2270_s2 + $0x168] sm:$0xff] %vm1192_vm1, %v1954_v3 }
  0xe8   :  { %v1435_v4 = vpop.f32.mrf.mxu0  ;;  %v1965_v9 = vpop.f32.mrf.mxu1 }
  0xe9   :  { %v1133_v6 = vadd.f32 %v1132_v2, %v1070_v1  ;;  %1208 = vst.msk [vmem:[%s2270_s2 + $0x78] sm:$0xff] %vm1192_vm1, %v1435_v4  ;;  %v1000_v7 = vadd.f32 %v1432_v58, %v999_v0  ;;  %1237 = vst.msk [vmem:[%s2270_s2 + $0x160] sm:$0xff] %vm1192_vm1, %v1965_v9  ;;  %v1073_v18 = vmul.f32 %v1435_v4, %v1435_v4 }
  0xea   :  { %v544_v10 = vpop.f32.mrf.mxu0  ;;  %v1976_v15 = vpop.f32.mrf.mxu1 }
  0xeb   :  { %v1001_v11 = vadd.f32 %v1000_v7, %v544_v10  ;;  %v1072_v13 = vmul.f32 %v544_v10, %v544_v10  ;;  %v1134_v14 = vadd.f32 %v1133_v6, %v1071_v5  ;;  %1207 = vst.msk [vmem:[%s2270_s2 + $0x70] sm:$0xff] %vm1192_vm1, %v544_v10  ;;  %1240 = vst.msk [vmem:[%s2270_s2 + $0x178] sm:$0xff] %vm1192_vm1, %v1976_v15 }
  0xec   :  { %v1438_v16 = vpop.f32.mrf.mxu0  ;;  %v1987_v21 = vpop.f32.mrf.mxu1 }
  0xed   :  { %v1135_v19 = vadd.f32 %v1134_v14, %v1072_v13  ;;  %1210 = vst.msk [vmem:[%s2270_s2 + $0x88] sm:$0xff] %vm1192_vm1, %v1438_v16  ;;  %v1002_v20 = vadd.f32 %v1435_v4, %v1001_v11  ;;  %1239 = vst.msk [vmem:[%s2270_s2 + $0x170] sm:$0xff] %vm1192_vm1, %v1987_v21  ;;  %v1075_v30 = vmul.f32 %v1438_v16, %v1438_v16 }
  0xee   :  { %v554_v23 = vpop.f32.mrf.mxu0  ;;  %v1998_v28 = vpop.f32.mrf.mxu1 }
  0xef   :  { %v1003_v24 = vadd.f32 %v1002_v20, %v554_v23  ;;  %v1074_v25 = vmul.f32 %v554_v23, %v554_v23  ;;  %v1136_v26 = vadd.f32 %v1135_v19, %v1073_v18  ;;  %1209 = vst.msk [vmem:[%s2270_s2 + $0x80] sm:$0xff] %vm1192_vm1, %v554_v23  ;;  %1242 = vst.msk [vmem:[%s2270_s2 + $0x188] sm:$0xff] %vm1192_vm1, %v1998_v28 }
  0xf0   :  { %v1441_v29 = vpop.f32.mrf.mxu0  ;;  %v2009_v34 = vpop.f32.mrf.mxu1 }
  0xf1   :  { %v1137_v31 = vadd.f32 %v1136_v26, %v1074_v25  ;;  %1212 = vst.msk [vmem:[%s2270_s2 + $0x98] sm:$0xff] %vm1192_vm1, %v1441_v29  ;;  %v1004_v33 = vadd.f32 %v1438_v16, %v1003_v24  ;;  %1241 = vst.msk [vmem:[%s2270_s2 + $0x180] sm:$0xff] %vm1192_vm1, %v2009_v34  ;;  %v1077_v43 = vmul.f32 %v1441_v29, %v1441_v29 }
  0xf2   :  { %v564_v35 = vpop.f32.mrf.mxu0  ;;  %v2020_v40 = vpop.f32.mrf.mxu1 }
  0xf3   :  { %v1005_v36 = vadd.f32 %v1004_v33, %v564_v35  ;;  %v1076_v38 = vmul.f32 %v564_v35, %v564_v35  ;;  %v1138_v39 = vadd.f32 %v1137_v31, %v1075_v30  ;;  %1211 = vst.msk [vmem:[%s2270_s2 + $0x90] sm:$0xff] %vm1192_vm1, %v564_v35  ;;  %1244 = vst.msk [vmem:[%s2270_s2 + $0x198] sm:$0xff] %vm1192_vm1, %v2020_v40 }
  0xf4   :  { %v1444_v41 = vpop.f32.mrf.mxu0  ;;  %v2031_v46 = vpop.f32.mrf.mxu1 }
  0xf5   :  { %v1139_v44 = vadd.f32 %v1138_v39, %v1076_v38  ;;  %1214 = vst.msk [vmem:[%s2270_s2 + $0xa8] sm:$0xff] %vm1192_vm1, %v1444_v41  ;;  %v1006_v45 = vadd.f32 %v1441_v29, %v1005_v36  ;;  %1243 = vst.msk [vmem:[%s2270_s2 + $0x190] sm:$0xff] %vm1192_vm1, %v2031_v46  ;;  %v1079_v55 = vmul.f32 %v1444_v41, %v1444_v41 }
  0xf6   :  { %v574_v48 = vpop.f32.mrf.mxu0  ;;  %v2042_v53 = vpop.f32.mrf.mxu1 }
  0xf7   :  { %v1007_v49 = vadd.f32 %v1006_v45, %v574_v48  ;;  %v1078_v50 = vmul.f32 %v574_v48, %v574_v48  ;;  %v1140_v51 = vadd.f32 %v1139_v44, %v1077_v43  ;;  %1213 = vst.msk [vmem:[%s2270_s2 + $0xa0] sm:$0xff] %vm1192_vm1, %v574_v48  ;;  %1246 = vst.msk [vmem:[%s2270_s2 + $0x1a8] sm:$0xff] %vm1192_vm1, %v2042_v53 }
  0xf8   :  { %v1447_v54 = vpop.f32.mrf.mxu0  ;;  %v2053_v59 = vpop.f32.mrf.mxu1 }
  0xf9   :  { %v1141_v56 = vadd.f32 %v1140_v51, %v1078_v50  ;;  %1216 = vst.msk [vmem:[%s2270_s2 + $0xb8] sm:$0xff] %vm1192_vm1, %v1447_v54  ;;  %v1008_v58 = vadd.f32 %v1444_v41, %v1007_v49  ;;  %1245 = vst.msk [vmem:[%s2270_s2 + $0x1a0] sm:$0xff] %vm1192_vm1, %v2053_v59  ;;  %v1081_v4 = vmul.f32 %v1447_v54, %v1447_v54 }
  0xfa   :  { %v584_v60 = vpop.f32.mrf.mxu0  ;;  %v2064_v1 = vpop.f32.mrf.mxu1 }
  0xfb   :  { %v1009_v61 = vadd.f32 %v1008_v58, %v584_v60  ;;  %v1080_v63 = vmul.f32 %v584_v60, %v584_v60  ;;  %v1142_v0 = vadd.f32 %v1141_v56, %v1079_v55  ;;  %1215 = vst.msk [vmem:[%s2270_s2 + $0xb0] sm:$0xff] %vm1192_vm1, %v584_v60  ;;  %1248 = vst.msk [vmem:[%s2270_s2 + $0x1b8] sm:$0xff] %vm1192_vm1, %v2064_v1 }
  0xfc   :  { %v1450_v2 = vpop.f32.mrf.mxu0  ;;  %v2075_v7 = vpop.f32.mrf.mxu1 }
  0xfd   :  { %v1143_v5 = vadd.f32 %v1142_v0, %v1080_v63  ;;  %1218 = vst.msk [vmem:[%s2270_s2 + $0xc8] sm:$0xff] %vm1192_vm1, %v1450_v2  ;;  %v1010_v6 = vadd.f32 %v1447_v54, %v1009_v61  ;;  %1247 = vst.msk [vmem:[%s2270_s2 + $0x1b0] sm:$0xff] %vm1192_vm1, %v2075_v7  ;;  %v1083_v19 = vmul.f32 %v1450_v2, %v1450_v2 }
  0xfe   :  { %v594_v10 = vpop.f32.mrf.mxu0  ;;  %v2086_v16 = vpop.f32.mrf.mxu1 }
  0xff   :  { %v1011_v11 = vadd.f32 %v1010_v6, %v594_v10  ;;  %v1082_v13 = vmul.f32 %v594_v10, %v594_v10  ;;  %v1144_v14 = vadd.f32 %v1143_v5, %v1081_v4  ;;  %1217 = vst.msk [vmem:[%s2270_s2 + $0xc0] sm:$0xff] %vm1192_vm1, %v594_v10  ;;  %1250 = vst.msk [vmem:[%s2270_s2 + $0x1c8] sm:$0xff] %vm1192_vm1, %v2086_v16 }
 0x100   :  { %v1453_v18 = vpop.f32.mrf.mxu0  ;;  %v2097_v24 = vpop.f32.mrf.mxu1 }
 0x101   :  { %v1145_v20 = vadd.f32 %v1144_v14, %v1082_v13  ;;  %1220 = vst.msk [vmem:[%s2270_s2 + $0xd8] sm:$0xff] %vm1192_vm1, %v1453_v18  ;;  %v1012_v23 = vadd.f32 %v1450_v2, %v1011_v11  ;;  %1249 = vst.msk [vmem:[%s2270_s2 + $0x1c0] sm:$0xff] %vm1192_vm1, %v2097_v24  ;;  %v1085_v35 = vmul.f32 %v1453_v18, %v1453_v18 }
 0x102   :  { %v604_v25 = vpop.f32.mrf.mxu0  ;;  %v2108_v31 = vpop.f32.mrf.mxu1  ;;  %v1090_v11 = vmul.f32 %v1833_v12, %v1833_v12  ;;  %v1091_v13 = vmul.f32 %v1822_v8, %v1822_v8 }
 0x103   :  { %v1013_v26 = vadd.f32 %v1012_v23, %v604_v25  ;;  %v1084_v29 = vmul.f32 %v604_v25, %v604_v25  ;;  %v1146_v30 = vadd.f32 %v1145_v20, %v1083_v19  ;;  %1219 = vst.msk [vmem:[%s2270_s2 + $0xd0] sm:$0xff] %vm1192_vm1, %v604_v25  ;;  %1252 = vst.msk [vmem:[%s2270_s2 + $0x1d8] sm:$0xff] %vm1192_vm1, %v2108_v31 }
 0x104   :  { %v1456_v33 = vpop.f32.mrf.mxu0  ;;  %v2119_v39 = vpop.f32.mrf.mxu1  ;;  %v1092_v20 = vmul.f32 %v1855_v22, %v1855_v22  ;;  %v1093_v25 = vmul.f32 %v1844_v17, %v1844_v17 }
 0x105   :  { %v1147_v36 = vadd.f32 %v1146_v30, %v1084_v29  ;;  %1222 = vst.msk [vmem:[%s2270_s2 + $0xe8] sm:$0xff] %vm1192_vm1, %v1456_v33  ;;  %v1014_v38 = vadd.f32 %v1453_v18, %v1013_v26  ;;  %1251 = vst.msk [vmem:[%s2270_s2 + $0x1d0] sm:$0xff] %vm1192_vm1, %v2119_v39  ;;  %v1087_v50 = vmul.f32 %v1456_v33, %v1456_v33 }
 0x106   :  { %v614_v41 = vpop.f32.mrf.mxu0  ;;  %v2130_v48 = vpop.f32.mrf.mxu1  ;;  %v1094_v30 = vmul.f32 %v1877_v32, %v1877_v32 }
 0x107   :  { %v1015_v43 = vadd.f32 %v1014_v38, %v614_v41  ;;  %v1086_v44 = vmul.f32 %v614_v41, %v614_v41  ;;  %v1148_v45 = vadd.f32 %v1147_v36, %v1085_v35  ;;  %1221 = vst.msk [vmem:[%s2270_s2 + $0xe0] sm:$0xff] %vm1192_vm1, %v614_v41  ;;  %1254 = vst.msk [vmem:[%s2270_s2 + $0x1e8] sm:$0xff] %vm1192_vm1, %v2130_v48 }
 0x108   :  { %v1459_v49 = vpop.f32.mrf.mxu0  ;;  %v2141_v55 = vpop.f32.mrf.mxu1  ;;  %v1096_v38 = vmul.f32 %v1899_v42, %v1899_v42 }
 0x109   :  { %v1149_v51 = vadd.f32 %v1148_v45, %v1086_v44  ;;  %1224 = vst.msk [vmem:[%s2270_s2 + $0xf8] sm:$0xff] %vm1192_vm1, %v1459_v49  ;;  %v1016_v54 = vadd.f32 %v1456_v33, %v1015_v43  ;;  %1253 = vst.msk [vmem:[%s2270_s2 + $0x1e0] sm:$0xff] %vm1192_vm1, %v2141_v55  ;;  %v1089_v0 = vmul.f32 %v1459_v49, %v1459_v49 }
 0x10a   :  { %v624_v56 = vpop.f32.mrf.mxu0  ;;  %v2152_v63 = vpop.f32.mrf.mxu1  ;;  %v1098_v45 = vmul.f32 %v1921_v52, %v1921_v52 }
 0x10b   :  { %v1017_v58 = vadd.f32 %v1016_v54, %v624_v56  ;;  %v1088_v60 = vmul.f32 %v624_v56, %v624_v56  ;;  %v1150_v61 = vadd.f32 %v1149_v51, %v1087_v50  ;;  %1223 = vst.msk [vmem:[%s2270_s2 + $0xf0] sm:$0xff] %vm1192_vm1, %v624_v56  ;;  %1256 = vst.msk [vmem:[%s2270_s2 + $0x1f8] sm:$0xff] %vm1192_vm1, %v2152_v63 }
 0x10c   :  { %v2159_v5 = vpop.f32.mrf.mxu1  ;;  %v1100_v54 = vmul.f32 %v1943_v62, %v1943_v62 }
 0x10d   :  { %v1018_v2 = vadd.f32 %v1459_v49, %v1017_v58  ;;  %v1151_v4 = vadd.f32 %v1150_v61, %v1088_v60  ;;  %1255 = vst.msk [vmem:[%s2270_s2 + $0x1f0] sm:$0xff] %vm1192_vm1, %v2159_v5  ;;  %v1102_v61 = vmul.f32 %v1965_v9, %v1965_v9 }
 0x10f   :  { %v1152_v6 = vadd.f32 %v1151_v4, %v1089_v0  ;;  %v1019_v10 = vadd.f32 %v1018_v2, %v1833_v12 }
 0x111   :  { %v1153_v14 = vadd.f32 %v1152_v6, %v1090_v11  ;;  %v1020_v18 = vadd.f32 %v1822_v8, %v1019_v10  ;;  %v1095_v8 = vmul.f32 %v1866_v27, %v1866_v27  ;;  %v1104_v6 = vmul.f32 %v1987_v21, %v1987_v21 }
 0x113   :  { %v1021_v19 = vadd.f32 %v1020_v18, %v1855_v22  ;;  %v1154_v23 = vadd.f32 %v1153_v14, %v1091_v13  ;;  %v1106_v14 = vmul.f32 %v2009_v34, %v2009_v34 }
 0x115   :  { %v1155_v26 = vadd.f32 %v1154_v23, %v1092_v20  ;;  %v1022_v29 = vadd.f32 %v1844_v17, %v1021_v19  ;;  %v1097_v17 = vmul.f32 %v1888_v37, %v1888_v37  ;;  %v1108_v23 = vmul.f32 %v2031_v46, %v2031_v46 }
 0x117   :  { %v1023_v12 = vadd.f32 %v1022_v29, %v1877_v32  ;;  %v1156_v33 = vadd.f32 %v1155_v26, %v1093_v25 }
 0x119   :  { %v1157_v35 = vadd.f32 %v1156_v33, %v1094_v30  ;;  %v1024_v36 = vadd.f32 %v1866_v27, %v1023_v12  ;;  %v1099_v27 = vmul.f32 %v1910_v47, %v1910_v47  ;;  %v1110_v12 = vmul.f32 %v2053_v59, %v2053_v59 }
 0x11b   :  { %v1025_v22 = vadd.f32 %v1024_v36, %v1899_v42  ;;  %v1158_v41 = vadd.f32 %v1157_v35, %v1095_v8  ;;  %v1112_v35 = vmul.f32 %v2075_v7, %v2075_v7 }
 0x11d   :  { %v1159_v43 = vadd.f32 %v1158_v41, %v1096_v38  ;;  %v1026_v44 = vadd.f32 %v1888_v37, %v1025_v22  ;;  %v1101_v37 = vmul.f32 %v1932_v57, %v1932_v57  ;;  %v1114_v41 = vmul.f32 %v2097_v24, %v2097_v24 }
 0x11f   :  { %v1027_v32 = vadd.f32 %v1026_v44, %v1921_v52  ;;  %v1160_v49 = vadd.f32 %v1159_v43, %v1097_v17 }
 0x121   :  { %v1161_v50 = vadd.f32 %v1160_v49, %v1098_v45  ;;  %v1028_v51 = vadd.f32 %v1910_v47, %v1027_v32  ;;  %v1103_v47 = vmul.f32 %v1954_v3, %v1954_v3  ;;  %v1116_v32 = vmul.f32 %v2119_v39, %v2119_v39 }
 0x123   :  { %v1029_v42 = vadd.f32 %v1028_v51, %v1943_v62  ;;  %v1162_v56 = vadd.f32 %v1161_v50, %v1099_v27  ;;  %v1118_v50 = vmul.f32 %v2141_v55, %v2141_v55 }
 0x125   :  { %v1163_v58 = vadd.f32 %v1162_v56, %v1100_v54  ;;  %v1030_v60 = vadd.f32 %v1932_v57, %v1029_v42  ;;  %v1105_v57 = vmul.f32 %v1976_v15, %v1976_v15  ;;  %v1120_v56 = vmul.f32 %v2159_v5, %v2159_v5 }
 0x127   :  { %v1031_v52 = vadd.f32 %v1030_v60, %v1965_v9  ;;  %v1164_v0 = vadd.f32 %v1163_v58, %v1101_v37 }
 0x129   :  { %v1165_v2 = vadd.f32 %v1164_v0, %v1102_v61  ;;  %v1032_v4 = vadd.f32 %v1954_v3, %v1031_v52  ;;  %v1107_v3 = vmul.f32 %v1998_v28, %v1998_v28 }
 0x12b   :  { %v1033_v62 = vadd.f32 %v1032_v4, %v1987_v21  ;;  %v1166_v10 = vadd.f32 %v1165_v2, %v1103_v47 }
 0x12d   :  { %v1167_v11 = vadd.f32 %v1166_v10, %v1104_v6  ;;  %v1034_v13 = vadd.f32 %v1976_v15, %v1033_v62  ;;  %v1109_v15 = vmul.f32 %v2020_v40, %v2020_v40 }
 0x12f   :  { %v1035_v9 = vadd.f32 %v1034_v13, %v2009_v34  ;;  %v1168_v18 = vadd.f32 %v1167_v11, %v1105_v57 }
 0x131   :  { %v1169_v19 = vadd.f32 %v1168_v18, %v1106_v14  ;;  %v1036_v20 = vadd.f32 %v1998_v28, %v1035_v9  ;;  %v1111_v28 = vmul.f32 %v2042_v53, %v2042_v53 }
 0x133   :  { %v1037_v21 = vadd.f32 %v1036_v20, %v2031_v46  ;;  %v1170_v25 = vadd.f32 %v1169_v19, %v1107_v3 }
 0x135   :  { %v1171_v26 = vadd.f32 %v1170_v25, %v1108_v23  ;;  %v1038_v29 = vadd.f32 %v2020_v40, %v1037_v21  ;;  %v1113_v40 = vmul.f32 %v2064_v1, %v2064_v1 }
 0x137   :  { %v1039_v34 = vadd.f32 %v1038_v29, %v2053_v59  ;;  %v1172_v30 = vadd.f32 %v1171_v26, %v1109_v15 }
 0x139   :  { %v1173_v33 = vadd.f32 %v1172_v30, %v1110_v12  ;;  %v1040_v8 = vadd.f32 %v2042_v53, %v1039_v34  ;;  %v1115_v53 = vmul.f32 %v2086_v16, %v2086_v16 }
 0x13b   :  { %v1041_v46 = vadd.f32 %v1040_v8, %v2075_v7  ;;  %v1174_v36 = vadd.f32 %v1173_v33, %v1111_v28 }
 0x13d   :  { %v1175_v22 = vadd.f32 %v1174_v36, %v1112_v35  ;;  %v1042_v38 = vadd.f32 %v2064_v1, %v1041_v46  ;;  %v1117_v1 = vmul.f32 %v2108_v31, %v2108_v31 }
 0x13f   :  { %v1043_v59 = vadd.f32 %v1042_v38, %v2097_v24  ;;  %v1176_v17 = vadd.f32 %v1175_v22, %v1113_v40 }
 0x141   :  { %v1177_v43 = vadd.f32 %v1176_v17, %v1114_v41  ;;  %v1044_v44 = vadd.f32 %v2086_v16, %v1043_v59  ;;  %v1119_v16 = vmul.f32 %v2130_v48, %v2130_v48 }
 0x143   :  { %v1045_v7 = vadd.f32 %v1044_v44, %v2119_v39  ;;  %v1178_v45 = vadd.f32 %v1177_v43, %v1115_v53 }
 0x145   :  { %v1179_v49 = vadd.f32 %v1178_v45, %v1116_v32  ;;  %v1046_v27 = vadd.f32 %v2108_v31, %v1045_v7  ;;  %v1121_v31 = vmul.f32 %v2152_v63, %v2152_v63 }
 0x147   :  { %v1047_v24 = vadd.f32 %v1046_v27, %v2141_v55  ;;  %v1180_v51 = vadd.f32 %v1179_v49, %v1117_v1 }
 0x149   :  { %v1181_v42 = vadd.f32 %v1180_v51, %v1118_v50  ;;  %v1048_v54 = vadd.f32 %v2130_v48, %v1047_v24 }
 0x14b   :  { %v1049_v39 = vadd.f32 %v1048_v54, %v2159_v5  ;;  %v1182_v37 = vadd.f32 %v1181_v42, %v1119_v16 }
 0x14d   :  { %v1050_v58 = vadd.f32 %v2152_v63, %v1049_v39  ;;  %v1183_v60 = vadd.f32 %v1182_v37, %v1120_v56 }
 0x14f   :  { %v1051_v55 = vrot.slane %v1050_v58, 4  ;;  %v1184_v52 = vadd.f32 %v1183_v60, %v1121_v31 }
 0x151   :  { %v1052_v61 = vadd.f32 %v1051_v55, %v1050_v58  ;;  %v1185_v0 = vrot.slane %v1184_v52, 4 }
 0x153   :  { %v1053_v47 = vrot.slane %v1052_v61, 2  ;;  %v1186_v2 = vadd.f32 %v1185_v0, %v1184_v52 }
 0x155   :  { %v1054_v4 = vadd.f32 %v1053_v47, %v1052_v61  ;;  %v1187_v48 = vrot.slane %v1186_v2, 2 }
 0x157   :  { %v1055_v62 = vrot.slane %v1054_v4, 1  ;;  %v1188_v6 = vadd.f32 %v1187_v48, %v1186_v2 }
 0x159   :  { %v1056_v10 = vadd.f32 %v1055_v62, %v1054_v4  ;;  %v1189_v57 = vrot.slane %v1188_v6, 1 }
 0x15b   :  { %1057 = vst [vmem:[%s2271_s3] sm:$0x1] %v1056_v10  ;;  %v1190_v5 = vadd.f32 %v1189_v57, %v1188_v6 }
 0x15d   :  { %1191 = vst [vmem:[%s2272_s4] sm:$0x1] %v1190_v5 }

</bundles_post_ra>
